<compile_context>
chip_gen: v7x
topology: tpu7x:2x2x1
jax: 0.10.0
libtpu: 0.0.40
codegen_flags: <defaults>
</compile_context>

<pallas_src>
import jax
import jax.numpy as jnp
from jax import lax
from jax.experimental import pallas as pl
from jax.experimental.pallas import tpu as pltpu

EPS = 1e-5
GROWTH = 32
BN_SIZE = 4
BOTTLENECK = BN_SIZE * GROWTH          # 128
BLOCK_CONFIG = (6, 12, 48, 32)         # densenet201
INIT_FEATURES = 64

_CPARAMS = pltpu.CompilerParams(vmem_limit_bytes=48 * 1024 * 1024)


# ----------------------------- Pallas kernels ------------------------------

def stem_conv_bn_relu(cols, w0, s0, b0):
    """im2col'd 7x7/s2 conv + folded BN + ReLU, parallel grid over pixel rows."""
    M, K = cols.shape
    Cout = w0.shape[1]
    TM = 256 if M % 256 == 0 else M

    def kernel(c_ref, w_ref, s_ref, b_ref, o_ref):
        y = jnp.dot(c_ref[...].astype(jnp.bfloat16), w_ref[...],
                    preferred_element_type=jnp.float32)
        o_ref[...] = jnp.maximum(y * s_ref[...] + b_ref[...], 0.0)

    return pl.pallas_call(
        kernel,
        grid=(M // TM,),
        in_specs=[pl.BlockSpec((TM, K), lambda i: (i, 0)),
                  pl.BlockSpec((K, Cout), lambda i: (0, 0)),
                  pl.BlockSpec((1, Cout), lambda i: (0, 0)),
                  pl.BlockSpec((1, Cout), lambda i: (0, 0))],
        out_specs=pl.BlockSpec((TM, Cout), lambda i: (i, 0)),
        out_shape=jax.ShapeDtypeStruct((M, Cout), jnp.float32),
        compiler_params=pltpu.CompilerParams(
            dimension_semantics=("parallel",),
            vmem_limit_bytes=48 * 1024 * 1024),
    )(cols, w0, s0, b0)


def matmul_bf16(a, w):
    """(M,K)f32 x (K,N)bf16 -> (M,N)f32 ; transition 1x1 convs (post-pool)."""
    M, K = a.shape
    N = w.shape[1]

    def kernel(a_ref, w_ref, o_ref):
        o_ref[...] = jnp.dot(a_ref[...].astype(jnp.bfloat16), w_ref[...],
                             preferred_element_type=jnp.float32)

    return pl.pallas_call(
        kernel,
        grid=(1,),
        in_specs=[pl.BlockSpec((M, K), lambda i: (0, 0)),
                  pl.BlockSpec((K, N), lambda i: (0, 0))],
        out_specs=pl.BlockSpec((M, N), lambda i: (0, 0)),
        out_shape=jax.ShapeDtypeStruct((M, N), jnp.float32),
        compiler_params=_CPARAMS,
    )(a, w)


def gap_heads(feat, pool, w, b):
    """Global average pool (as a tiny matmul) + all classifier heads, fused."""
    M, C = feat.shape
    Nb = pool.shape[0]
    O = w.shape[1]

    def kernel(x_ref, p_ref, w_ref, b_ref, o_ref):
        m = jnp.dot(p_ref[...], x_ref[...], preferred_element_type=jnp.float32)
        o_ref[...] = jnp.dot(m.astype(jnp.bfloat16), w_ref[...],
                             preferred_element_type=jnp.float32) + b_ref[...]

    return pl.pallas_call(
        kernel,
        grid=(1,),
        in_specs=[pl.BlockSpec((M, C), lambda i: (0, 0)),
                  pl.BlockSpec((Nb, M), lambda i: (0, 0)),
                  pl.BlockSpec((C, O), lambda i: (0, 0)),
                  pl.BlockSpec((1, O), lambda i: (0, 0))],
        out_specs=pl.BlockSpec((Nb, O), lambda i: (0, 0)),
        out_shape=jax.ShapeDtypeStruct((Nb, O), jnp.float32),
        compiler_params=_CPARAMS,
    )(feat, pool, w, b)


def dense_block(x2, masks, bp, N, H, W):
    """One whole DenseNet block (+ its trailing transition-BN / norm5 + ReLU)
    as a single pallas_call.  The concat buffer is the VMEM-resident output
    ref; 1x1-conv weights are streamed from HBM with a double-buffered DMA at
    exact (unpadded) K; the 3x3 conv uses 9 shifted-row taps of a VMEM scratch.
    """
    M, c_in = x2.shape
    L = bp['nlayers']
    c_out = bp['c_out']
    G = GROWTH
    PADR = ((W + 1 + 15) // 16) * 16      # row padding for the shifted taps

    def kernel(x_ref, m_ref, s1_ref, b1_ref, s2_ref, b2_ref, w2_ref,
               ps_ref, pb_ref, w1_hbm, o_ref, w1_buf, t_scr, w1_sem):
        # concat buffer lives in the output ref for the whole block
        o_ref[:, :c_in] = x_ref[...]
        o_ref[:, c_in:] = jnp.zeros((M, c_out - c_in), jnp.float32)
        t_scr[...] = jnp.zeros_like(t_scr)         # border rows stay zero

        def w1_copy(li, slot):
            cin = c_in + li * G
            return pltpu.make_async_copy(w1_hbm.at[li, :cin, :],
                                         w1_buf.at[slot, :cin, :],
                                         w1_sem.at[slot])

        w1_copy(0, 0).start()
        for li in range(L):                        # static unroll -> static offsets
            cin = c_in + li * G
            slot = li % 2
            w1_copy(li, slot).wait()
            if li + 1 < L:
                w1_copy(li + 1, 1 - slot).start()  # prefetch next layer's weights

            # norm1 + relu + conv1 (1x1) over exactly the filled channels
            h = jnp.maximum(o_ref[:, :cin] * s1_ref[li:li + 1, :cin]
                            + b1_ref[li:li + 1, :cin], 0.0)
            y = jnp.dot(h.astype(jnp.bfloat16), w1_buf[slot, :cin, :],
                        preferred_element_type=jnp.float32)
            # norm2 + relu
            t = jnp.maximum(y * s2_ref[li:li + 1, :] + b2_ref[li:li + 1, :], 0.0)
            t_scr[PADR:PADR + M, :] = t.astype(jnp.bfloat16)
            # conv2 (3x3, pad 1): 9 shifted-row taps, masked at image borders
            acc = jnp.zeros((M, G), jnp.float32)
            for di in (-1, 0, 1):
                for dj in (-1, 0, 1):
                    ti = (di + 1) * 3 + (dj + 1)
                    sh = di * W + dj
                    tap = t_scr[PADR + sh:PADR + sh + M, :]
                    wt = w2_ref[li, :, G * ti:G * (ti + 1)]
                    acc = acc + (jnp.dot(tap, wt,
                                         preferred_element_type=jnp.float32)
                                 * m_ref[:, ti:ti + 1])
            o_ref[:, cin:cin + G] = acc            # in-place concat, no HBM trip

        # fused transition-BN / norm5 + ReLU over the full concatenation
        o_ref[...] = jnp.maximum(o_ref[...] * ps_ref[...] + pb_ref[...], 0.0)

    return pl.pallas_call(
        kernel,
        grid=(1,),
        in_specs=[pl.BlockSpec((M, c_in), lambda i: (0, 0)),
                  pl.BlockSpec((M, 9), lambda i: (0, 0)),
                  pl.BlockSpec((L, c_out), lambda i: (0, 0)),
                  pl.BlockSpec((L, c_out), lambda i: (0, 0)),
                  pl.BlockSpec((L, BOTTLENECK), lambda i: (0, 0)),
                  pl.BlockSpec((L, BOTTLENECK), lambda i: (0, 0)),
                  pl.BlockSpec((L, BOTTLENECK, 9 * G), lambda i: (0, 0, 0)),
                  pl.BlockSpec((1, c_out), lambda i: (0, 0)),
                  pl.BlockSpec((1, c_out), lambda i: (0, 0)),
                  pl.BlockSpec(memory_space=pl.ANY)],       # w1 stays in HBM
        out_specs=pl.BlockSpec((M, c_out), lambda i: (0, 0)),
        out_shape=jax.ShapeDtypeStruct((M, c_out), jnp.float32),
        scratch_shapes=[pltpu.VMEM((2, c_out, BOTTLENECK), jnp.bfloat16),
                        pltpu.VMEM((M + 2 * PADR, BOTTLENECK), jnp.bfloat16),
                        pltpu.SemaphoreType.DMA((2,))],
        compiler_params=_CPARAMS,
    )(x2, masks, bp['s1'], bp['b1'], bp['s2'], bp['b2'], bp['w2'],
      bp['post_s'], bp['post_b'], bp['w1'])


# ------------------------------ plain-JAX glue ------------------------------

def im2col(x, kh, kw, stride, pad):
    """x: (N,H,W,C) -> (N,Ho,Wo, kh*kw*C) with (kh, kw, C) flattening order."""
    N, H, W, C = x.shape
    xp = jnp.pad(x, ((0, 0), (pad, pad), (pad, pad), (0, 0)))
    Ho = (H + 2 * pad - kh) // stride + 1
    Wo = (W + 2 * pad - kw) // stride + 1
    cols = []
    for i in range(kh):
        for j in range(kw):
            cols.append(xp[:, i:i + stride * Ho:stride,
                           j:j + stride * Wo:stride, :])
    return jnp.concatenate(cols, axis=-1), Ho, Wo


def maxpool_3x3_s2_p1(x):
    return lax.reduce_window(x, -jnp.inf, lax.max,
                             (1, 3, 3, 1), (1, 2, 2, 1),
                             [(0, 0), (1, 1), (1, 1), (0, 0)])


def avgpool_2x2(x):
    # NOTE: assumes even H, W (true at every stage for the 64x64 test input).
    N, H, W, C = x.shape
    return x.reshape(N, H // 2, 2, W // 2, 2, C).mean(axis=(2, 4))


def make_tap_masks(N, H, W):
    """(N*H*W, 9) validity mask (f32) for the 9 shifted-row conv taps."""
    hh = jnp.arange(H).reshape(H, 1)
    ww = jnp.arange(W).reshape(1, W)
    cols = []
    for di in (-1, 0, 1):
        for dj in (-1, 0, 1):
            v = ((hh + di >= 0) & (hh + di < H) &
                 (ww + dj >= 0) & (ww + dj < W)).astype(jnp.float32)
            cols.append(v.reshape(H * W))
    m = jnp.stack(cols, axis=1)                   # (H*W, 9)
    return jnp.tile(m, (N, 1))                    # (N*H*W, 9)


# ----------------------------- parameter setup ------------------------------

class _Keys:
    def __init__(self, key):
        self.key = key
        self.i = 0

    def __call__(self):
        self.i += 1
        return jax.random.fold_in(self.key, self.i)


def _he(key, shape, fan_in):
    return jax.random.normal(key, shape, jnp.float32) * jnp.sqrt(2.0 / fan_in)


def _bn(kg, c):
    gamma = 1.0 + 0.01 * jax.random.normal(kg(), (c,), jnp.float32)
    beta = 0.01 * jax.random.normal(kg(), (c,), jnp.float32)
    running_mean = jnp.zeros((c,), jnp.float32)
    running_var = jnp.ones((c,), jnp.float32)
    scale = gamma / jnp.sqrt(running_var + EPS)
    bias = beta - running_mean * scale
    return scale, bias


def init_params(key, in_chan=3, out_chan=(2,)):
    # TODO(synk): pretrained torchvision weights are not loadable here.
    kg = _Keys(key)
    p = {}
    # stem conv0 (7x7, s2, p3, no bias) in im2col form, K padded lane-dense
    k0 = 49 * in_chan
    stem_k = ((k0 + 127) // 128) * 128
    w0 = _he(kg(), (7, 7, in_chan, INIT_FEATURES), k0).reshape(k0, INIT_FEATURES)
    p['conv0_w'] = jnp.pad(w0, ((0, stem_k - k0), (0, 0))).astype(jnp.bfloat16)
    p['stem_k'] = stem_k
    s0, b0 = _bn(kg, INIT_FEATURES)
    p['norm0'] = (s0.reshape(1, -1), b0.reshape(1, -1))

    c = INIT_FEATURES
    blocks = []
    for bi, L in enumerate(BLOCK_CONFIG):
        c_out = c + L * GROWTH
        s1s, b1s, w1s, s2s, b2s, w2s = [], [], [], [], [], []
        for li in range(L):
            cin = c + li * GROWTH
            s1, b1 = _bn(kg, cin)
            s1s.append(jnp.pad(s1, (0, c_out - cin)))
            b1s.append(jnp.pad(b1, (0, c_out - cin)))
            w1 = _he(kg(), (cin, BOTTLENECK), cin)
            w1s.append(jnp.pad(w1, ((0, c_out - cin), (0, 0))))   # zero rows never fetched
            s2, b2 = _bn(kg, BOTTLENECK)
            s2s.append(s2)
            b2s.append(b2)
            w2 = _he(kg(), (3, 3, BOTTLENECK, GROWTH), 9 * BOTTLENECK)
            # pack as (128, 9*32): columns grouped per (kh, kw) tap
            w2s.append(jnp.transpose(w2, (2, 0, 1, 3)).reshape(BOTTLENECK,
                                                               9 * GROWTH))
        bp = dict(nlayers=L, c_in=c, c_out=c_out,
                  s1=jnp.stack(s1s), b1=jnp.stack(b1s),
                  s2=jnp.stack(s2s), b2=jnp.stack(b2s),
                  w1=jnp.stack(w1s).astype(jnp.bfloat16),   # (L, c_out, 128), HBM
                  w2=jnp.stack(w2s).astype(jnp.bfloat16))   # (L, 128, 288)
        c = c_out
        if bi != len(BLOCK_CONFIG) - 1:
            ts, tb = _bn(kg, c)                   # transition BN (fused into block)
            bp['post_s'] = ts.reshape(1, -1)
            bp['post_b'] = tb.reshape(1, -1)
            bp['trans_w'] = _he(kg(), (c, c // 2), c).astype(jnp.bfloat16)
            c = c // 2
        else:
            s5, b5 = _bn(kg, c)                   # norm5 (fused into last block)
            bp['post_s'] = s5.reshape(1, -1)
            bp['post_b'] = b5.reshape(1, -1)
        blocks.append(bp)
    p['blocks'] = blocks                          # c == 1920 for densenet201

    # classifier heads (all heads concatenated into one matmul)
    bound = 1.0 / (c ** 0.5)
    hws, hbs = [], []
    for oc in out_chan:
        hws.append(jax.random.uniform(kg(), (c, oc), jnp.float32, -bound, bound))
        hbs.append(jax.random.uniform(kg(), (1, oc), jnp.float32, -bound, bound))
    p['head_w'] = jnp.concatenate(hws, axis=1).astype(jnp.bfloat16)
    p['head_b'] = jnp.concatenate(hbs, axis=1)
    p['head_splits'] = tuple(out_chan)
    return p


# -------------------------------- forward ----------------------------------

def densenet201mtl_forward(params, x_nchw):
    x = jnp.transpose(x_nchw, (0, 2, 3, 1)).astype(jnp.float32)   # NCHW -> NHWC
    N = x.shape[0]

    # --- stem: conv0 -> norm0 -> relu0 -> maxpool0 ---
    cols, Ho, Wo = im2col(x, 7, 7, 2, 3)
    cols = cols.reshape(N * Ho * Wo, -1)
    cols = jnp.pad(cols, ((0, 0), (0, params['stem_k'] - cols.shape[1])))
    s0, b0 = params['norm0']
    y = stem_conv_bn_relu(cols, params['conv0_w'], s0, b0)
    x = maxpool_3x3_s2_p1(y.reshape(N, Ho, Wo, INIT_FEATURES))

    N, H, W, C = x.shape
    feat = x.reshape(N * H * W, C)

    # --- dense blocks: one fused Pallas kernel per block ---
    for bp in params['blocks']:
        masks = make_tap_masks(N, H, W)
        feat = dense_block(feat, masks, bp, N, H, W)     # (M, c_out), post BN+ReLU
        if 'trans_w' in bp:
            c_out = feat.shape[1]
            # pool BEFORE the 1x1 conv (they commute exactly): 4x fewer rows
            pooled = avgpool_2x2(feat.reshape(N, H, W, c_out))
            H //= 2
            W //= 2
            feat = matmul_bf16(pooled.reshape(N * H * W, c_out), bp['trans_w'])

    # --- (norm5 + ReLU already fused into block 4) GAP + heads ---
    HW = H * W
    pool = jnp.repeat(jnp.eye(N, dtype=jnp.float32), HW, axis=1) / float(HW)
    logits = gap_heads(feat, pool, params['head_w'], params['head_b'])
    outs = []
    off = 0
    for oc in params['head_splits']:
        outs.append(logits[:, off:off + oc])
        off += oc
    return outs


# ---------------------------------- main ------------------------------------

if __name__ == "__main__":
    # in_chan=3 (default), out_chan=[2] (default), downsample=0.
    # 64x64 is the smallest spatial size that keeps every pool/transition even.
    x = jax.random.normal(jax.random.PRNGKey(0), (2, 3, 64, 64), jnp.float32)
    params = init_params(jax.random.PRNGKey(42), in_chan=3, out_chan=(2,))

    outs = densenet201mtl_forward(params, x)
    outs = [jax.block_until_ready(o) for o in outs]

    assert len(outs) == 1 and outs[0].shape == (2, 2)
    assert outs[0].dtype == jnp.float32
    assert bool(jnp.isfinite(outs[0]).all())
    print("KERNEL_OK")
</pallas_src>

<mosaic_0001>
module attributes {stable_mosaic.version = 11 : i64} {
  func.func @kernel(%arg0: i32, %arg1: memref<256x256xf32, #tpu.memory_space<vmem>>, %arg2: memref<256x64xbf16, #tpu.memory_space<vmem>>, %arg3: memref<1x64xf32, #tpu.memory_space<vmem>>, %arg4: memref<1x64xf32, #tpu.memory_space<vmem>>, %arg5: memref<256x64xf32, #tpu.memory_space<vmem>>) attributes {dimension_semantics = [#tpu.dimension_semantics<parallel>], iteration_bounds = array<i64: 8>, scalar_prefetch = 0 : i64, scratch_operands = 0 : i64, tpu.core_type = #tpu.core_type<tc>, window_params = [{transform_indices = @transform_0, window_bounds = array<i64: 256, 256>}, {pipeline_mode = #tpu.pipeline_mode<synchronous>, transform_indices = @transform_1, window_bounds = array<i64: 256, 64>}, {pipeline_mode = #tpu.pipeline_mode<synchronous>, transform_indices = @transform_2, window_bounds = array<i64: 1, 64>}, {pipeline_mode = #tpu.pipeline_mode<synchronous>, transform_indices = @transform_3, window_bounds = array<i64: 1, 64>}, {transform_indices = @transform_4, window_bounds = array<i64: 256, 64>}]} {
    %c0 = arith.constant 0 : index
    %c0_0 = arith.constant 0 : index
    %0 = vector.load %arg1[%c0, %c0_0] : memref<256x256xf32, #tpu.memory_space<vmem>>, vector<256x256xf32>
    %1 = arith.truncf %0 : vector<256x256xf32> to vector<256x256xbf16>
    %c0_1 = arith.constant 0 : index
    %c0_2 = arith.constant 0 : index
    %2 = vector.load %arg2[%c0_1, %c0_2] : memref<256x64xbf16, #tpu.memory_space<vmem>>, vector<256x64xbf16>
    %cst = arith.constant dense<0.000000e+00> : vector<256x64xf32>
    %3 = tpu.matmul %1, %2, %cst {dimension_numbers = #tpu.dot_dimension_numbers<[1], [0], [0], [1], [0, 0, 1, 1], [], []>} : vector<256x256xbf16>, vector<256x64xbf16>, vector<256x64xf32> -> vector<256x64xf32>
    %c0_3 = arith.constant 0 : index
    %c0_4 = arith.constant 0 : index
    %4 = vector.load %arg3[%c0_3, %c0_4] : memref<1x64xf32, #tpu.memory_space<vmem>>, vector<1x64xf32>
    %5 = vector.broadcast %4 : vector<1x64xf32> to vector<256x64xf32>
    %6 = arith.mulf %3, %5 : vector<256x64xf32>
    %c0_5 = arith.constant 0 : index
    %c0_6 = arith.constant 0 : index
    %7 = vector.load %arg4[%c0_5, %c0_6] : memref<1x64xf32, #tpu.memory_space<vmem>>, vector<1x64xf32>
    %8 = vector.broadcast %7 : vector<1x64xf32> to vector<256x64xf32>
    %9 = arith.addf %6, %8 : vector<256x64xf32>
    %cst_7 = arith.constant 0.000000e+00 : f32
    %10 = vector.broadcast %cst_7 : f32 to vector<256x64xf32>
    %11 = arith.maximumf %9, %10 : vector<256x64xf32>
    %c0_8 = arith.constant 0 : index
    %c0_9 = arith.constant 0 : index
    %12 = vector.load %arg5[%c0_8, %c0_9] : memref<256x64xf32, #tpu.memory_space<vmem>>, vector<256x64xf32>
    tpu.vector_store %arg5[%c0_8, %c0_9], %11 {strides = array<i32>} : memref<256x64xf32, #tpu.memory_space<vmem>>, vector<256x64xf32>,
    return
  }
  func.func @transform_0(%arg0: i32) -> (i32, i32) {
    %c0_i32 = arith.constant 0 : i32
    %c0_i32_0 = arith.constant 0 : i32
    return %arg0, %c0_i32 : i32, i32
  }
  func.func @transform_1(%arg0: i32) -> (i32, i32) {
    %c0_i32 = arith.constant 0 : i32
    %c0_i32_0 = arith.constant 0 : i32
    %c0_i32_1 = arith.constant 0 : i32
    return %c0_i32, %c0_i32_0 : i32, i32
  }
  func.func @transform_2(%arg0: i32) -> (i32, i32) {
    %c0_i32 = arith.constant 0 : i32
    %c0_i32_0 = arith.constant 0 : i32
    %c0_i32_1 = arith.constant 0 : i32
    return %c0_i32, %c0_i32_0 : i32, i32
  }
  func.func @transform_3(%arg0: i32) -> (i32, i32) {
    %c0_i32 = arith.constant 0 : i32
    %c0_i32_0 = arith.constant 0 : i32
    %c0_i32_1 = arith.constant 0 : i32
    return %c0_i32, %c0_i32_0 : i32, i32
  }
  func.func @transform_4(%arg0: i32) -> (i32, i32) {
    %c0_i32 = arith.constant 0 : i32
    %c0_i32_0 = arith.constant 0 : i32
    return %arg0, %c0_i32 : i32, i32
  }
}

</mosaic_0001>

<bundles_post_ra>
// kernel: tpu_custom_call.1
= control target key start
LH: loop header
LB: loop body
LE: loop exit
PB: predicated region body
PF: predicated region fallthrough
CT: control target
= control target key end

     0   :  { %9 = vsyncpa [#allocation3], 0  ;;  %s1698_s0 = inlined_call_operand.hbm [shape: f32[2048,256], index: 0, kind: input, shape index: {}]   ;;  %s1699_s1 = inlined_call_operand.vmem [shape: bf16[256,64], index: 1, kind: input, shape index: {}]   ;;  %s1700_s2 = inlined_call_operand.hbm [shape: f32[1,64], index: 2, kind: input, shape index: {}]   ;;  %s1701_s3 = inlined_call_operand.hbm [shape: f32[1,64], index: 3, kind: input, shape index: {}]   ;;  %s1702_s4 = inlined_call_operand.vmem [shape: f32[2048,64], index: 4, kind: output, shape index: {}]  }
   0x1   :  { %11 = vsyncpa [#allocation3 + $0x1], 0 }
   0x2   :  { %12 = vsyncpa [#allocation5], 0  ;;  %s1261_s15 = smov 0   ;;  %s1263_s16 = smov 0  }
   0x3   :  { %s1265_s17 = smov 0   ;;  %s1267_s18 = smov 0  }
   0x4 LB: > { %s861_s19 = sadd.s32 4294967295, %s1229_s18   ;;  %s1281_s20 = sadd.s32 1, %s1229_s18   ;;  %s1229_s18 = sphi %s1267_s18, %s1721_s18   ;;  %s1225_s17 = sphi %s1265_s17, %s1720_s17   ;;  %s1221_s16 = sphi %s1263_s16, %s1719_s16   ;;  %s1217_s15 = sphi %s1261_s15, %s1718_s15  }
   0x5   : > { %s22_s21 = ssub.s32 %s1229_s18, %s1281_s20  ;;  %s25_s22 = sadd.s32 1, %s1225_s17 }
   0x6   : > { %p23_p0 = scmp.eq.s32.totalorder %s22_s21, 0  ;;  %p32_p1 = scmp.ne.s32.totalorder %s1225_s17, %s1221_s16 }
   0x7   : > { %p33_p2 = scmp.eq.s32.totalorder %s1229_s18, 0  ;;  %p38_p3 = scmp.ne.s32.totalorder %s1221_s16, %s1217_s15 }
   0x8   : > { %s1291_s23 = scalar_select %p23_p0, %s1225_s17, %s25_s22  }
   0x9   : > { %p1293_p4 = por %p33_p2, %p32_p1  ;;  %p1299_p5 = scmp.eq.s32.totalorder %s861_s19, 0 }
   0xa   : > { %p863_p6 = scmp.ge.s32.totalorder %s1229_s18, 1  ;;  %p138_p7 = scmp.lt.s32.totalorder %s1229_s18, 9 }
   0xb   : > { %s1709_s25 = scalar_select %p1299_p5, 1, 0 }
   0xc   : > { %p1307_p8 = por %p1299_p5, %p38_p3  ;;  %p1311_p9 = pnand %p863_p6, %p138_p7 }
   0xd   : > { %s1231_s28 = smov [#allocation4]   ;;  %p1050_p11 = scmp.lt.s32.totalorder %s1229_s18, 8 }
   0xe   : > { %s1710_s26 = scalar_select %p1307_p8, 1, 0 }
   0xf   : > { %s1711_s27 = scalar_select %p1311_p9, 1, 0 }
  0x10   : > { %s154_s29 = sshll.u32 %s1231_s28, 4  ;;  %p1037_p10 = pneg %p1311_p9  ;;  %s155_s29 = int_to_ptr.vmem [resolvable:$true] %s154_s29 }
  0x11   : > { %s1232_s5 = smov [#allocation6]   ;;  %p1326_p13 = pnand %p1050_p11, %p1293_p4 }
  0x12   : > { %p1320_p12 = pnand %p1037_p10, %p1299_p5  ;;  %s165_s6 = sshll.u32 %s1232_s5, 4  ;;  %s1330_s6 = int_to_ptr.vmem [resolvable:$true] %s165_s6 }
  0x13   : > { %s1713_s7 = scalar_select %p1326_p13, 1, 0 }
  0x14   : > { %s176_s8 = sand.u32 1, %s1225_s17   ;;  %s1105_s11 = scalar_lea.hbm %s1700_s2, 16 }
  0x15   : > { %p1106_p0 = scmp.ne.s32.totalorder %s1700_s2, %s1105_s11  ;;  %p1107_p1 = pneg %p1320_p12 }
  0x16   : > { %p1112_p4 = scmp.lt.u32.totalorder %s1105_s11, %s1700_s2 }
  0x17   : > { %p1108_p2 = pnand %p1107_p1, %p1106_p0 }
  0x19   : > { %p1109_p3 = pneg %p1108_p2 }
  0x1b   : > { %p1114_p6 = pnand %p1112_p4, %p1109_p3 }
  0x1d   : > { %1117 = shalt.err (!%p1114_p6)
}
  0x1e   : > { %s1118_s21 = scalar_lea.vmem %s155_s29, 16  ;;  %s1125_s22 = scalar_lea.vmem %s155_s29, 32 }
  0x1f   : > { %p1119_p7 = scmp.ne.s32.totalorder %s155_s29, %s1118_s21  ;;  %p1126_p5 = scmp.lt.s32.totalorder %s155_s29, %s155_s29 }
  0x20   : > { %p1127_p8 = scmp.lt.s32.totalorder %s1125_s22, %s1118_s21 }
  0x21   : > { %p1121_p10 = pnand %p1119_p7, %p1107_p1 }
  0x22   : > { %p1128_p9 = por %p1127_p8, %p1126_p5 }
  0x23   : > { %p1122_p11 = pneg %p1121_p10 }
  0x25   : > { %p1129_p13 = pnand %p1128_p9, %p1122_p11 }
  0x27   : > { %1132 = shalt.err (!%p1129_p13)
}
  0x28   : > { %1040 = dma.hbm_to_vmem [thread:$0]  (!%p1320_p12), %s1700_s2, 16, %s155_s29, [#allocation5]  }
  0x29   : > { %s1133_s10 = scalar_lea.hbm %s1701_s3, 16 }
  0x2a   : > { %p1134_p0 = scmp.ne.s32.totalorder %s1701_s3, %s1133_s10  ;;  %p1140_p9 = scmp.lt.u32.totalorder %s1133_s10, %s1701_s3 }
  0x2c   : > { %p1136_p5 = pnand %p1134_p0, %p1107_p1 }
  0x2e   : > { %p1137_p8 = pneg %p1136_p5 }
  0x30   : > { %p1142_p13 = pnand %p1140_p9, %p1137_p8 }
  0x32   : > { %1145 = shalt.err (!%p1142_p13)
}
  0x33   : > { %s1146_s29 = scalar_lea.vmem %s1330_s6, 16  ;;  %s1153_s15 = scalar_lea.vmem %s1330_s6, 32 }
  0x34   : > { %p1147_p2 = scmp.ne.s32.totalorder %s1330_s6, %s1146_s29  ;;  %p1154_p6 = scmp.lt.s32.totalorder %s1330_s6, %s1330_s6 }
  0x35   : > { %p1155_p7 = scmp.lt.s32.totalorder %s1153_s15, %s1146_s29 }
  0x36   : > { %p1149_p3 = pnand %p1147_p2, %p1107_p1 }
  0x37   : > { %p1156_p10 = por %p1155_p7, %p1154_p6 }
  0x38   : > { %p1150_p4 = pneg %p1149_p3 }
  0x3a   : > { %p1157_p11 = pnand %p1156_p10, %p1150_p4 }
  0x3c   : > { %1160 = shalt.err (!%p1157_p11)
}
  0x3d   : > { %1043 = dma.hbm_to_vmem [thread:$0]  (!%p1320_p12), %s1701_s3, 16, %s1330_s6, [#allocation5]  }
  0x3e   : > { %s867_s24 = sshll.u32 %s176_s8, 9  ;;  %s898_s28 = sshll.u32 %s1229_s18, 13 }
  0x3f   : > { %s1387_s10 = scalar_lea.hbm %s1698_s0, %s898_s28  ;;  %s180_s30 = scalar_lea.vmem [#allocation2], %s867_s24 }
  0x40   : > { %s188_s11 = sshll.u32 %s180_s30, 4  ;;  %s1393_s12 = scalar_lea.sflag [#allocation3], %s176_s8  ;;  %s1389_s11 = int_to_ptr.vmem [resolvable:$true] %s188_s11 }
  0x41   : > { %s1161_s6 = scalar_lea.hbm %s1387_s10, 8192  ;;  %p1714_p1 = scmp.ne.s32.totalorder %s1713_s7, 0 }
  0x42   : > { %p1162_p12 = scmp.ne.s32.totalorder %s1387_s10, %s1161_s6  ;;  %s1166_s29 = scalar_lea.hbm %s1698_s0, 65536 }
  0x43   : > { %p1163_p0 = pneg %p1714_p1  ;;  %p1167_p9 = scmp.lt.u32.totalorder %s1387_s10, %s1698_s0 }
  0x44   : > { %p1168_p13 = scmp.lt.u32.totalorder %s1166_s29, %s1161_s6  ;;  %p1170_p3 = scmp.lt.u32.totalorder %s1161_s6, %s1387_s10 }
  0x45   : > { %p1164_p5 = pnand %p1163_p0, %p1162_p12 }
  0x46   : > { %p1169_p2 = por %p1168_p13, %p1167_p9 }
  0x47   : > { %p1165_p8 = pneg %p1164_p5 }
  0x48   : > { %p1171_p4 = por %p1170_p3, %p1169_p2 }
  0x4a   : > { %p1172_p6 = pnand %p1171_p4, %p1165_p8 }
  0x4c   : > { %1175 = shalt.err (!%p1172_p6)
}
  0x4d   : > { %s1176_s8 = scalar_lea.vmem %s1389_s11, 8192  ;;  %s1233_s22 = smov [#allocation2]  }
  0x4e   : > { %p1177_p7 = scmp.ne.s32.totalorder %s1389_s11, %s1176_s8  ;;  %s1181_s24 = sshll.u32 %s1233_s22, 4  ;;  %s1182_s24 = int_to_ptr.vmem [resolvable:$false] %s1181_s24 }
  0x4f   : > { %s1183_s28 = scalar_lea.vmem %s1182_s24, 16384  ;;  %p1184_p12 = scmp.lt.s32.totalorder %s1389_s11, %s1182_s24 }
  0x50   : > { %p1179_p10 = pnand %p1177_p7, %p1163_p0  ;;  %p1185_p5 = scmp.lt.s32.totalorder %s1183_s28, %s1176_s8 }
  0x52   : > { %p1180_p11 = pneg %p1179_p10  ;;  %p1186_p9 = por %p1185_p5, %p1184_p12 }
  0x54   : > { %p1187_p13 = pnand %p1186_p9, %p1180_p11 }
  0x56   : > { %1190 = shalt.err (!%p1187_p13)
}
  0x57   : > { %s1234_s5 = smov 256   ;;  %s1235_s9 = smov 16  }
  0x58   : > { %1047 = dma.hbm_to_vmem [thread:$0]  (!%p1714_p1), %s1387_s10, 8192, %s1389_s11, %s1393_s12, %s1234_s5, %s1234_s5, %s1235_s9  }
  0x59   : > { %p1715_p0 = scmp.ne.s32.totalorder %s1711_s27, 0 }
  0x5a   : > { %s202_s30 = sand.u32 (!%p1715_p0), 1, %s1221_s16   ;;  %p1716_p8 = scmp.ne.s32.totalorder (!%p1715_p0), %s1710_s26, 0 }
  0x5b   : > { %200 = sbr.rel (%p1715_p0) target bundleno = 416 (0x1a0), region = 36  ;;  %s872_s6 = sshll.u32 (!%p1715_p0), %s202_s30, 9 }
  0x5c   : > { %s203_s13 = scalar_lea.sflag (!%p1715_p0), [#allocation3], %s202_s30  ;;  %s1424_s14 = scalar_lea.vmem (!%p1715_p0), [#allocation2], %s872_s6 }
  0x62   : > { %1208 = dma.done.wait (%p1716_p8), %s203_s13, 8192  }
  0x63   : > { %1210 = vsyncadd (%p1716_p8), %s203_s13, 4294959104  ;;  %p1717_p2 = scmp.ne.s32.totalorder %s1709_s25, 0 }
  0x65   : > { %1212 = dma.done.wait (%p1717_p2), [#allocation5], 32  }
  0x66   : > { %1214 = vsyncadd (%p1717_p2), [#allocation5], 4294967264  ;;  %v1089_v0 = vld [vmem:[%s1699_s1 + $0x40] sm:$0xff]   ;;  %v1091_v2 = vld [vmem:[%s1699_s1 + $0x48] sm:$0xff]   ;;  %s875_s28 = sshll.u32 %s861_s19, 5  ;;  %vm742_vm0 = vcmask 523264  }
  0x67   : > { %v1090_v1 = vld [vmem:[%s1699_s1] sm:$0xff]   ;;  %899 = vmatprep.subr.bf16.mxu0 %v1089_v0  ;;  %1011 = vmatprep.subr.bf16.mxu1 %v1089_v0  ;;  %v1092_v3 = vld [vmem:[%s1699_s1 + $0x8] sm:$0xff]   ;;  %v1093_v4 = vld [vmem:[%s1699_s1 + $0x50] sm:$0xff]   ;;  %p241_p1 = scmp.lt.s32.totalorder %s875_s28, 255 }
  0x68   : > { %900 = vmatpush3.bf16.msra.mxu0 %v1090_v1  ;;  %1019 = vmatpush3.bf16.msra.mxu1 %v1090_v1  ;;  %v1094_v5 = vld [vmem:[%s1699_s1 + $0x10] sm:$0xff]   ;;  %v1095_v6 = vld [vmem:[%s1699_s1 + $0x58] sm:$0xff]   ;;  %v1097_v8 = vld [vmem:[%s1699_s1 + $0x60] sm:$0xff]  }
  0x69   : > { %901 = vmatprep.subr.bf16.mxu0 %v1091_v2  ;;  %1012 = vmatprep.subr.bf16.mxu1 %v1091_v2  ;;  %v1096_v7 = vld [vmem:[%s1699_s1 + $0x18] sm:$0xff]   ;;  %v1098_v9 = vld [vmem:[%s1699_s1 + $0x20] sm:$0xff]   ;;  %v1099_v10 = vld [vmem:[%s1699_s1 + $0x68] sm:$0xff]   ;;  %s1723_s28 = smov (!%p241_p1, %s875_s28), 255 }
  0x6a   : > { %v248_v11 = vld [vmem:[%s1424_s14 + $0x8] sm:$0xff]  ;;  %v250_v12 = vld [vmem:[%s1424_s14 + $0x18] sm:$0xff]  ;;  %v1101_v18 = vld [vmem:[%s1699_s1 + $0x70] sm:$0xff]  }
  0x6b   : > { %v280_v13 = vld [vmem:[%s1424_s14 + $0x108] sm:$0xff]  ;;  %v312_v14 = vpack.c.bf16 %v250_v12, %v248_v11  ;;  %v282_v15 = vld [vmem:[%s1424_s14 + $0x118] sm:$0xff]  ;;  %v1102_v19 = vld [vmem:[%s1699_s1 + $0x30] sm:$0xff]  }
  0x6c   : > { %902 = vmatpush3.bf16.msra.mxu0 %v1092_v3  ;;  %1020 = vmatpush3.bf16.msra.mxu1 %v1092_v3  ;;  %v328_v16 = vpack.c.bf16 %v282_v15, %v280_v13  ;;  %v1100_v17 = vld [vmem:[%s1699_s1 + $0x28] sm:$0xff]   ;;  %v1103_v20 = vld [vmem:[%s1699_s1 + $0x78] sm:$0xff]   ;;  %v247_v22 = vld [vmem:[%s1424_s14] sm:$0xff] }
  0x6d   : > { %903 = vmatprep.subr.bf16.mxu0 %v1093_v4  ;;  %1013 = vmatprep.subr.bf16.mxu1 %v1093_v4  ;;  %v1104_v21 = vld [vmem:[%s1699_s1 + $0x38] sm:$0xff]   ;;  %v249_v23 = vld [vmem:[%s1424_s14 + $0x10] sm:$0xff]  ;;  %v279_v24 = vld [vmem:[%s1424_s14 + $0x100] sm:$0xff] }
  0x6e   : > { %503 = vmatprep.mubr.bf16.mxu0 %v312_v14  ;;  %567 = vmatprep.mubr.bf16.mxu1 %v328_v16  ;;  %v281_v25 = vld [vmem:[%s1424_s14 + $0x110] sm:$0xff]  ;;  %v252_v26 = vld [vmem:[%s1424_s14 + $0x28] sm:$0xff]  ;;  %v254_v27 = vld [vmem:[%s1424_s14 + $0x38] sm:$0xff]  ;;  %v311_v30 = vpack.c.bf16 %v249_v23, %v247_v22 }
  0x6f   : > { %v284_v28 = vld [vmem:[%s1424_s14 + $0x128] sm:$0xff]  ;;  %v286_v29 = vld [vmem:[%s1424_s14 + $0x138] sm:$0xff]  ;;  %v327_v31 = vpack.c.bf16 %v281_v25, %v279_v24  ;;  %v314_v32 = vpack.c.bf16 %v254_v27, %v252_v26  ;;  %v251_v34 = vld [vmem:[%s1424_s14 + $0x20] sm:$0xff] }
  0x70   : > { %904 = vmatpush3.bf16.msra.mxu0 %v1094_v5  ;;  %1021 = vmatpush3.bf16.msra.mxu1 %v1094_v5  ;;  %v330_v33 = vpack.c.bf16 %v286_v29, %v284_v28  ;;  %v253_v35 = vld [vmem:[%s1424_s14 + $0x30] sm:$0xff]  ;;  %v283_v36 = vld [vmem:[%s1424_s14 + $0x120] sm:$0xff]  ;;  %v256_v38 = vld [vmem:[%s1424_s14 + $0x48] sm:$0xff] }
  0x71   : > { %905 = vmatprep.subr.bf16.mxu0 %v1095_v6  ;;  %1014 = vmatprep.subr.bf16.mxu1 %v1095_v6  ;;  %v285_v37 = vld [vmem:[%s1424_s14 + $0x130] sm:$0xff]  ;;  %v258_v39 = vld [vmem:[%s1424_s14 + $0x58] sm:$0xff]  ;;  %v288_v40 = vld [vmem:[%s1424_s14 + $0x148] sm:$0xff]  ;;  %v313_v42 = vpack.c.bf16 %v253_v35, %v251_v34 }
  0x72   : > { %v290_v41 = vld [vmem:[%s1424_s14 + $0x158] sm:$0xff]  ;;  %v329_v43 = vpack.c.bf16 %v285_v37, %v283_v36  ;;  %v316_v44 = vpack.c.bf16 %v258_v39, %v256_v38  ;;  %v255_v46 = vld [vmem:[%s1424_s14 + $0x40] sm:$0xff]  ;;  %v257_v47 = vld [vmem:[%s1424_s14 + $0x50] sm:$0xff] }
  0x73   : > { %v332_v45 = vpack.c.bf16 %v290_v41, %v288_v40  ;;  %v287_v48 = vld [vmem:[%s1424_s14 + $0x140] sm:$0xff]  ;;  %v289_v49 = vld [vmem:[%s1424_s14 + $0x150] sm:$0xff]  ;;  %v260_v50 = vld [vmem:[%s1424_s14 + $0x68] sm:$0xff]  ;;  %v315_v54 = vpack.c.bf16 %v257_v47, %v255_v46 }
  0x74   : > { %906 = vmatpush3.bf16.msra.mxu0 %v1096_v7  ;;  %1022 = vmatpush3.bf16.msra.mxu1 %v1096_v7  ;;  %v262_v51 = vld [vmem:[%s1424_s14 + $0x78] sm:$0xff]  ;;  %v292_v52 = vld [vmem:[%s1424_s14 + $0x168] sm:$0xff]  ;;  %v331_v55 = vpack.c.bf16 %v289_v49, %v287_v48  ;;  %v259_v58 = vld [vmem:[%s1424_s14 + $0x60] sm:$0xff] }
  0x75   : > { %907 = vmatprep.subr.bf16.mxu0 %v1097_v8  ;;  %1015 = vmatprep.subr.bf16.mxu1 %v1097_v8  ;;  %v294_v53 = vld [vmem:[%s1424_s14 + $0x178] sm:$0xff]  ;;  %v318_v56 = vpack.c.bf16 %v262_v51, %v260_v50  ;;  %v261_v59 = vld [vmem:[%s1424_s14 + $0x70] sm:$0xff]  ;;  %v291_v60 = vld [vmem:[%s1424_s14 + $0x160] sm:$0xff] }
  0x76   : > { %v334_v57 = vpack.c.bf16 %v294_v53, %v292_v52  ;;  %v293_v61 = vld [vmem:[%s1424_s14 + $0x170] sm:$0xff]  ;;  %v264_v62 = vld [vmem:[%s1424_s14 + $0x88] sm:$0xff]  ;;  %v266_v63 = vld [vmem:[%s1424_s14 + $0x98] sm:$0xff]  ;;  %v317_v2 = vpack.c.bf16 %v261_v59, %v259_v58 }
  0x77   : > { %v296_v0 = vld [vmem:[%s1424_s14 + $0x188] sm:$0xff]  ;;  %v298_v1 = vld [vmem:[%s1424_s14 + $0x198] sm:$0xff]  ;;  %v333_v3 = vpack.c.bf16 %v293_v61, %v291_v60  ;;  %v320_v4 = vpack.c.bf16 %v266_v63, %v264_v62  ;;  %v263_v6 = vld [vmem:[%s1424_s14 + $0x80] sm:$0xff] }
  0x78   : > { %908 = vmatpush3.bf16.msra.mxu0 %v1098_v9  ;;  %1023 = vmatpush3.bf16.msra.mxu1 %v1098_v9  ;;  %v336_v5 = vpack.c.bf16 %v298_v1, %v296_v0  ;;  %v265_v7 = vld [vmem:[%s1424_s14 + $0x90] sm:$0xff]  ;;  %v295_v8 = vld [vmem:[%s1424_s14 + $0x180] sm:$0xff]  ;;  %v270_v11 = vld [vmem:[%s1424_s14 + $0xb8] sm:$0xff] }
  0x79   : > { %909 = vmatprep.subr.bf16.mxu0 %v1099_v10  ;;  %1016 = vmatprep.subr.bf16.mxu1 %v1099_v10  ;;  %v297_v9 = vld [vmem:[%s1424_s14 + $0x190] sm:$0xff]  ;;  %v268_v10 = vld [vmem:[%s1424_s14 + $0xa8] sm:$0xff]  ;;  %v302_v13 = vld [vmem:[%s1424_s14 + $0x1b8] sm:$0xff]  ;;  %v319_v14 = vpack.c.bf16 %v265_v7, %v263_v6 }
  0x7a   : > { %v300_v12 = vld [vmem:[%s1424_s14 + $0x1a8] sm:$0xff]  ;;  %v335_v15 = vpack.c.bf16 %v297_v9, %v295_v8  ;;  %v322_v16 = vpack.c.bf16 %v270_v11, %v268_v10  ;;  %v274_v23 = vld [vmem:[%s1424_s14 + $0xd8] sm:$0xff]  ;;  %v1548_v51 = vld [vmem:[#allocation4] ss:$0 sm:$0xff] }
  0x7b   : > { %v272_v22 = vld [vmem:[%s1424_s14 + $0xc8] sm:$0xff]  ;;  %v306_v25 = vld [vmem:[%s1424_s14 + $0x1d8] sm:$0xff] }
  0x7c   : > { %910 = vmatpush3.bf16.msra.mxu0 %v1100_v17  ;;  %1024 = vmatpush3.bf16.msra.mxu1 %v1100_v17  ;;  %v338_v17 = vpack.c.bf16 %v302_v13, %v300_v12  ;;  %v304_v24 = vld [vmem:[%s1424_s14 + $0x1c8] sm:$0xff]  ;;  %v324_v28 = vpack.c.bf16 %v274_v23, %v272_v22  ;;  %v278_v35 = vld [vmem:[%s1424_s14 + $0xf8] sm:$0xff] }
  0x7d   : > { %911 = vmatprep.subr.bf16.mxu0 %v1101_v18  ;;  %1017 = vmatprep.subr.bf16.mxu1 %v1101_v18  ;;  %v267_v18 = vld [vmem:[%s1424_s14 + $0xa0] sm:$0xff]  ;;  %v340_v29 = vpack.c.bf16 %v306_v25, %v304_v24  ;;  %v276_v34 = vld [vmem:[%s1424_s14 + $0xe8] sm:$0xff]  ;;  %v310_v37 = vld [vmem:[%s1424_s14 + $0x1f8] sm:$0xff] }
  0x7e   : > { %v308_v36 = vld [vmem:[%s1424_s14 + $0x1e8] sm:$0xff]  ;;  %v326_v40 = vpack.c.bf16 %v278_v35, %v276_v34 }
  0x7f   : > { %v342_v41 = vpack.c.bf16 %v310_v37, %v308_v36 }
  0x80   : > { %912 = vmatpush3.bf16.msra.mxu0 %v1102_v19  ;;  %1025 = vmatpush3.bf16.msra.mxu1 %v1102_v19  ;;  %v269_v19 = vld [vmem:[%s1424_s14 + $0xb0] sm:$0xff] }
  0x81   : > { %913 = vmatprep.subr.bf16.mxu0 %v1103_v20  ;;  %1018 = vmatprep.subr.bf16.mxu1 %v1103_v20  ;;  %v299_v20 = vld [vmem:[%s1424_s14 + $0x1a0] sm:$0xff]  ;;  %v321_v26 = vpack.c.bf16 %v269_v19, %v267_v18 }
  0x84   : > { %914 = vmatpush3.bf16.msra.mxu0 %v1104_v21  ;;  %1026 = vmatpush3.bf16.msra.mxu1 %v1104_v21  ;;  %v301_v21 = vld [vmem:[%s1424_s14 + $0x1b0] sm:$0xff] }
  0x85   : > { %v337_v27 = vpack.c.bf16 %v301_v21, %v299_v20 }
  0x87   : > { %504 = vmatmul.mubr.bf16.vlgmr.msra.gmra.mrb[0].mxu0 %v311_v30  ;;  %568 = vmatmul.mubr.bf16.vlgmr.msra.gmra.mrb[0].mxu1 %v327_v31  ;;  %v271_v30 = vld [vmem:[%s1424_s14 + $0xc0] sm:$0xff]  ;;  %v273_v31 = vld [vmem:[%s1424_s14 + $0xd0] sm:$0xff] }
  0x88   : > { %511 = vmatprep.mubr.bf16.mxu0 %v314_v32  ;;  %575 = vmatprep.mubr.bf16.mxu1 %v330_v33  ;;  %v303_v32 = vld [vmem:[%s1424_s14 + $0x1c0] sm:$0xff]  ;;  %v305_v33 = vld [vmem:[%s1424_s14 + $0x1d0] sm:$0xff]  ;;  %v323_v38 = vpack.c.bf16 %v273_v31, %v271_v30 }
  0x89   : > { %v339_v39 = vpack.c.bf16 %v305_v33, %v303_v32 }
  0x8f   : > { %512 = vmatmul.mubr.bf16.gmra.mrb[4].mxu0 %v313_v42  ;;  %576 = vmatmul.mubr.bf16.gmra.mrb[4].mxu1 %v329_v43  ;;  %v275_v42 = vld [vmem:[%s1424_s14 + $0xe0] sm:$0xff]  ;;  %v277_v43 = vld [vmem:[%s1424_s14 + $0xf0] sm:$0xff] }
  0x90   : > { %519 = vmatprep.mubr.bf16.mxu0 %v316_v44  ;;  %583 = vmatprep.mubr.bf16.mxu1 %v332_v45  ;;  %v307_v44 = vld [vmem:[%s1424_s14 + $0x1e0] sm:$0xff]  ;;  %v309_v45 = vld [vmem:[%s1424_s14 + $0x1f0] sm:$0xff]  ;;  %v325_v46 = vpack.c.bf16 %v277_v43, %v275_v42  ;;  %s876_s14 = sshll.u32 %s1723_s28, 3 }
  0x91   : > { %v341_v47 = vpack.c.bf16 %v309_v45, %v307_v44  ;;  %s1561_s5 = scalar_lea.vmem %s1702_s4, %s876_s14 }
  0x97   : > { %520 = vmatmul.mubr.bf16.gmra.mrb[8].mxu0 %v315_v54  ;;  %584 = vmatmul.mubr.bf16.gmra.mrb[8].mxu1 %v331_v55 }
  0x98   : > { %527 = vmatprep.mubr.bf16.mxu0 %v318_v56  ;;  %591 = vmatprep.mubr.bf16.mxu1 %v334_v57  ;;  %v1550_v57 = vld [vmem:[#allocation6] ss:$0 sm:$0xff] }
  0x9f   : > { %528 = vmatmul.mubr.bf16.gmra.mrb[12].mxu0 %v317_v2  ;;  %592 = vmatmul.mubr.bf16.gmra.mrb[12].mxu1 %v333_v3 }
  0xa0   : > { %535 = vmatprep.mubr.bf16.mxu0 %v320_v4  ;;  %599 = vmatprep.mubr.bf16.mxu1 %v336_v5 }
  0xa7   : > { %536 = vmatmul.mubr.bf16.gmra.mrb[16].mxu0 %v319_v14  ;;  %600 = vmatmul.mubr.bf16.gmra.mrb[16].mxu1 %v335_v15 }
  0xa8   : > { %543 = vmatprep.mubr.bf16.mxu0 %v322_v16  ;;  %607 = vmatprep.mubr.bf16.mxu1 %v338_v17 }
  0xaf   : > { %544 = vmatmul.mubr.bf16.gmra.mrb[20].mxu0 %v321_v26  ;;  %608 = vmatmul.mubr.bf16.gmra.mrb[20].mxu1 %v337_v27 }
  0xb0   : > { %551 = vmatprep.mubr.bf16.mxu0 %v324_v28  ;;  %615 = vmatprep.mubr.bf16.mxu1 %v340_v29 }
  0xb7   : > { %552 = vmatmul.mubr.bf16.gmra.mrb[24].mxu0 %v323_v38  ;;  %616 = vmatmul.mubr.bf16.gmra.mrb[24].mxu1 %v339_v39 }
  0xb8   : > { %559 = vmatprep.mubr.bf16.mxu0 %v326_v40  ;;  %623 = vmatprep.mubr.bf16.mxu1 %v342_v41 }
  0xbf   : > { %560 = vmatmul.mubr.bf16.gmra.mrb[28].mxu0 %v325_v46  ;;  %624 = vmatmul.mubr.bf16.gmra.mrb[28].mxu1 %v341_v47 }
 0x15a   : > { %v915_v48 = vpop.f32.mrb[0].mxu0  ;;  %v963_v49 = vpop.f32.mrb[0].mxu1 }
 0x15b   : > { %v916_v50 = vpop.f32.mrb[1].mxu0  ;;  %v964_v52 = vpop.f32.mrb[1].mxu1 }
 0x15c   : > { %v917_v53 = vadd.f32 %v916_v50, %v915_v48  ;;  %v965_v54 = vadd.f32 %v964_v52, %v963_v49  ;;  %v918_v55 = vpop.f32.mrb[2].mxu0  ;;  %v966_v56 = vpop.f32.mrb[2].mxu1 }
 0x15d   : > { %v919_v58 = vpop.f32.mrb[3].mxu0  ;;  %v967_v59 = vpop.f32.mrb[3].mxu1 }
 0x15e   : > { %v639_v60 = vmul.f32 %v917_v53, %v1548_v51  ;;  %v655_v61 = vmul.f32 %v965_v54, %v1548_v51  ;;  %v920_v62 = vadd.f32 %v919_v58, %v918_v55  ;;  %v968_v63 = vadd.f32 %v967_v59, %v966_v56 }
 0x160   : > { %v678_v0 = vadd.f32 %v1550_v57, %v639_v60  ;;  %v694_v1 = vadd.f32 %v1550_v57, %v655_v61  ;;  %v640_v2 = vmul.f32 %v920_v62, %v1548_v51  ;;  %v656_v3 = vmul.f32 %v968_v63, %v1548_v51 }
 0x162   : > { %v710_v4 = vmax.f32 %v678_v0, 0.0  ;;  %v726_v5 = vmax.f32 %v694_v1, 0.0  ;;  %v679_v6 = vadd.f32 %v1550_v57, %v640_v2  ;;  %v695_v7 = vadd.f32 %v1550_v57, %v656_v3  ;;  %v921_v8 = vpop.f32.mrb[4].mxu0  ;;  %v969_v9 = vpop.f32.mrb[4].mxu1 }
 0x163   : > { %v922_v10 = vpop.f32.mrb[5].mxu0  ;;  %v970_v11 = vpop.f32.mrb[5].mxu1 }
 0x164   : > { %743 = vst.msk [vmem:[%s1561_s5] sm:$0xff] %vm742_vm0, %v710_v4  ;;  %759 = vst.msk [vmem:[%s1561_s5 + $0x80] sm:$0xff] %vm742_vm0, %v726_v5  ;;  %v711_v12 = vmax.f32 %v679_v6, 0.0  ;;  %v727_v13 = vmax.f32 %v695_v7, 0.0  ;;  %v923_v14 = vadd.f32 %v922_v10, %v921_v8  ;;  %v971_v15 = vadd.f32 %v970_v11, %v969_v9  ;;  %v924_v16 = vpop.f32.mrb[6].mxu0  ;;  %v972_v17 = vpop.f32.mrb[6].mxu1 }
 0x165   : > { %v925_v18 = vpop.f32.mrb[7].mxu0  ;;  %v973_v19 = vpop.f32.mrb[7].mxu1 }
 0x166   : > { %744 = vst.msk [vmem:[%s1561_s5 + $0x8] sm:$0xff] %vm742_vm0, %v711_v12  ;;  %760 = vst.msk [vmem:[%s1561_s5 + $0x88] sm:$0xff] %vm742_vm0, %v727_v13  ;;  %v641_v20 = vmul.f32 %v923_v14, %v1548_v51  ;;  %v657_v21 = vmul.f32 %v971_v15, %v1548_v51  ;;  %v926_v22 = vadd.f32 %v925_v18, %v924_v16 }
 0x167   : > { %v974_v23 = vadd.f32 %v973_v19, %v972_v17 }
 0x168   : > { %v680_v24 = vadd.f32 %v1550_v57, %v641_v20  ;;  %v696_v25 = vadd.f32 %v1550_v57, %v657_v21  ;;  %v642_v26 = vmul.f32 %v926_v22, %v1548_v51 }
 0x169   : > { %v658_v27 = vmul.f32 %v974_v23, %v1548_v51 }
 0x16a   : > { %v712_v28 = vmax.f32 %v680_v24, 0.0  ;;  %v728_v29 = vmax.f32 %v696_v25, 0.0  ;;  %v681_v30 = vadd.f32 %v1550_v57, %v642_v26  ;;  %v927_v32 = vpop.f32.mrb[8].mxu0  ;;  %v975_v33 = vpop.f32.mrb[8].mxu1 }
 0x16b   : > { %v697_v31 = vadd.f32 %v1550_v57, %v658_v27  ;;  %v928_v34 = vpop.f32.mrb[9].mxu0  ;;  %v976_v35 = vpop.f32.mrb[9].mxu1 }
 0x16c   : > { %745 = vst.msk [vmem:[%s1561_s5 + $0x10] sm:$0xff] %vm742_vm0, %v712_v28  ;;  %761 = vst.msk [vmem:[%s1561_s5 + $0x90] sm:$0xff] %vm742_vm0, %v728_v29  ;;  %v713_v36 = vmax.f32 %v681_v30, 0.0  ;;  %v929_v38 = vadd.f32 %v928_v34, %v927_v32  ;;  %v977_v39 = vadd.f32 %v976_v35, %v975_v33  ;;  %v930_v40 = vpop.f32.mrb[10].mxu0  ;;  %v978_v41 = vpop.f32.mrb[10].mxu1 }
 0x16d   : > { %v729_v37 = vmax.f32 %v697_v31, 0.0  ;;  %v931_v42 = vpop.f32.mrb[11].mxu0  ;;  %v979_v43 = vpop.f32.mrb[11].mxu1 }
 0x16e   : > { %746 = vst.msk [vmem:[%s1561_s5 + $0x18] sm:$0xff] %vm742_vm0, %v713_v36  ;;  %v643_v44 = vmul.f32 %v929_v38, %v1548_v51  ;;  %v659_v45 = vmul.f32 %v977_v39, %v1548_v51  ;;  %v932_v46 = vadd.f32 %v931_v42, %v930_v40  ;;  %v980_v47 = vadd.f32 %v979_v43, %v978_v41 }
 0x16f   : > { %762 = vst.msk [vmem:[%s1561_s5 + $0x98] sm:$0xff] %vm742_vm0, %v729_v37 }
 0x170   : > { %v682_v48 = vadd.f32 %v1550_v57, %v643_v44  ;;  %v698_v49 = vadd.f32 %v1550_v57, %v659_v45  ;;  %v644_v50 = vmul.f32 %v932_v46, %v1548_v51  ;;  %v660_v52 = vmul.f32 %v980_v47, %v1548_v51 }
 0x172   : > { %v714_v53 = vmax.f32 %v682_v48, 0.0  ;;  %v730_v54 = vmax.f32 %v698_v49, 0.0  ;;  %v683_v55 = vadd.f32 %v1550_v57, %v644_v50  ;;  %v699_v56 = vadd.f32 %v1550_v57, %v660_v52  ;;  %v933_v58 = vpop.f32.mrb[12].mxu0  ;;  %v981_v59 = vpop.f32.mrb[12].mxu1 }
 0x173   : > { %v934_v60 = vpop.f32.mrb[13].mxu0  ;;  %v982_v61 = vpop.f32.mrb[13].mxu1 }
 0x174   : > { %747 = vst.msk [vmem:[%s1561_s5 + $0x20] sm:$0xff] %vm742_vm0, %v714_v53  ;;  %763 = vst.msk [vmem:[%s1561_s5 + $0xa0] sm:$0xff] %vm742_vm0, %v730_v54  ;;  %v715_v62 = vmax.f32 %v683_v55, 0.0  ;;  %v731_v63 = vmax.f32 %v699_v56, 0.0  ;;  %v935_v0 = vadd.f32 %v934_v60, %v933_v58  ;;  %v983_v1 = vadd.f32 %v982_v61, %v981_v59  ;;  %v936_v2 = vpop.f32.mrb[14].mxu0  ;;  %v984_v3 = vpop.f32.mrb[14].mxu1 }
 0x175   : > { %v937_v4 = vpop.f32.mrb[15].mxu0  ;;  %v985_v5 = vpop.f32.mrb[15].mxu1 }
 0x176   : > { %748 = vst.msk [vmem:[%s1561_s5 + $0x28] sm:$0xff] %vm742_vm0, %v715_v62  ;;  %764 = vst.msk [vmem:[%s1561_s5 + $0xa8] sm:$0xff] %vm742_vm0, %v731_v63  ;;  %v645_v6 = vmul.f32 %v935_v0, %v1548_v51  ;;  %v661_v7 = vmul.f32 %v983_v1, %v1548_v51  ;;  %v938_v8 = vadd.f32 %v937_v4, %v936_v2 }
 0x177   : > { %v986_v9 = vadd.f32 %v985_v5, %v984_v3 }
 0x178   : > { %v684_v10 = vadd.f32 %v1550_v57, %v645_v6  ;;  %v700_v11 = vadd.f32 %v1550_v57, %v661_v7  ;;  %v646_v12 = vmul.f32 %v938_v8, %v1548_v51 }
 0x179   : > { %v662_v13 = vmul.f32 %v986_v9, %v1548_v51 }
 0x17a   : > { %v716_v14 = vmax.f32 %v684_v10, 0.0  ;;  %v732_v15 = vmax.f32 %v700_v11, 0.0  ;;  %v685_v16 = vadd.f32 %v1550_v57, %v646_v12  ;;  %v939_v18 = vpop.f32.mrb[16].mxu0  ;;  %v987_v19 = vpop.f32.mrb[16].mxu1 }
 0x17b   : > { %v701_v17 = vadd.f32 %v1550_v57, %v662_v13  ;;  %v940_v20 = vpop.f32.mrb[17].mxu0  ;;  %v988_v21 = vpop.f32.mrb[17].mxu1 }
 0x17c   : > { %749 = vst.msk [vmem:[%s1561_s5 + $0x30] sm:$0xff] %vm742_vm0, %v716_v14  ;;  %765 = vst.msk [vmem:[%s1561_s5 + $0xb0] sm:$0xff] %vm742_vm0, %v732_v15  ;;  %v717_v22 = vmax.f32 %v685_v16, 0.0  ;;  %v941_v24 = vadd.f32 %v940_v20, %v939_v18  ;;  %v989_v25 = vadd.f32 %v988_v21, %v987_v19  ;;  %v942_v26 = vpop.f32.mrb[18].mxu0  ;;  %v990_v27 = vpop.f32.mrb[18].mxu1 }
 0x17d   : > { %v733_v23 = vmax.f32 %v701_v17, 0.0  ;;  %v943_v28 = vpop.f32.mrb[19].mxu0  ;;  %v991_v29 = vpop.f32.mrb[19].mxu1 }
 0x17e   : > { %750 = vst.msk [vmem:[%s1561_s5 + $0x38] sm:$0xff] %vm742_vm0, %v717_v22  ;;  %v647_v30 = vmul.f32 %v941_v24, %v1548_v51  ;;  %v663_v31 = vmul.f32 %v989_v25, %v1548_v51  ;;  %v944_v32 = vadd.f32 %v943_v28, %v942_v26  ;;  %v992_v33 = vadd.f32 %v991_v29, %v990_v27 }
 0x17f   : > { %766 = vst.msk [vmem:[%s1561_s5 + $0xb8] sm:$0xff] %vm742_vm0, %v733_v23 }
 0x180   : > { %v686_v34 = vadd.f32 %v1550_v57, %v647_v30  ;;  %v702_v35 = vadd.f32 %v1550_v57, %v663_v31  ;;  %v648_v36 = vmul.f32 %v944_v32, %v1548_v51  ;;  %v664_v37 = vmul.f32 %v992_v33, %v1548_v51 }
 0x182   : > { %v718_v38 = vmax.f32 %v686_v34, 0.0  ;;  %v734_v39 = vmax.f32 %v702_v35, 0.0  ;;  %v687_v40 = vadd.f32 %v1550_v57, %v648_v36  ;;  %v703_v41 = vadd.f32 %v1550_v57, %v664_v37  ;;  %v945_v42 = vpop.f32.mrb[20].mxu0  ;;  %v993_v43 = vpop.f32.mrb[20].mxu1 }
 0x183   : > { %v946_v44 = vpop.f32.mrb[21].mxu0  ;;  %v994_v45 = vpop.f32.mrb[21].mxu1 }
 0x184   : > { %751 = vst.msk [vmem:[%s1561_s5 + $0x40] sm:$0xff] %vm742_vm0, %v718_v38  ;;  %767 = vst.msk [vmem:[%s1561_s5 + $0xc0] sm:$0xff] %vm742_vm0, %v734_v39  ;;  %v719_v46 = vmax.f32 %v687_v40, 0.0  ;;  %v735_v47 = vmax.f32 %v703_v41, 0.0  ;;  %v947_v48 = vadd.f32 %v946_v44, %v945_v42  ;;  %v995_v49 = vadd.f32 %v994_v45, %v993_v43  ;;  %v948_v50 = vpop.f32.mrb[22].mxu0  ;;  %v996_v52 = vpop.f32.mrb[22].mxu1 }
 0x185   : > { %v949_v53 = vpop.f32.mrb[23].mxu0  ;;  %v997_v54 = vpop.f32.mrb[23].mxu1 }
 0x186   : > { %752 = vst.msk [vmem:[%s1561_s5 + $0x48] sm:$0xff] %vm742_vm0, %v719_v46  ;;  %768 = vst.msk [vmem:[%s1561_s5 + $0xc8] sm:$0xff] %vm742_vm0, %v735_v47  ;;  %v649_v55 = vmul.f32 %v947_v48, %v1548_v51  ;;  %v665_v56 = vmul.f32 %v995_v49, %v1548_v51  ;;  %v950_v58 = vadd.f32 %v949_v53, %v948_v50 }
 0x187   : > { %v998_v59 = vadd.f32 %v997_v54, %v996_v52 }
 0x188   : > { %v688_v60 = vadd.f32 %v1550_v57, %v649_v55  ;;  %v704_v61 = vadd.f32 %v1550_v57, %v665_v56  ;;  %v650_v62 = vmul.f32 %v950_v58, %v1548_v51 }
 0x189   : > { %v666_v63 = vmul.f32 %v998_v59, %v1548_v51 }
 0x18a   : > { %v720_v0 = vmax.f32 %v688_v60, 0.0  ;;  %v736_v1 = vmax.f32 %v704_v61, 0.0  ;;  %v689_v2 = vadd.f32 %v1550_v57, %v650_v62  ;;  %v951_v4 = vpop.f32.mrb[24].mxu0  ;;  %v999_v5 = vpop.f32.mrb[24].mxu1 }
 0x18b   : > { %v705_v3 = vadd.f32 %v1550_v57, %v666_v63  ;;  %v952_v6 = vpop.f32.mrb[25].mxu0  ;;  %v1000_v7 = vpop.f32.mrb[25].mxu1 }
 0x18c   : > { %753 = vst.msk [vmem:[%s1561_s5 + $0x50] sm:$0xff] %vm742_vm0, %v720_v0  ;;  %769 = vst.msk [vmem:[%s1561_s5 + $0xd0] sm:$0xff] %vm742_vm0, %v736_v1  ;;  %v721_v8 = vmax.f32 %v689_v2, 0.0  ;;  %v953_v10 = vadd.f32 %v952_v6, %v951_v4  ;;  %v1001_v11 = vadd.f32 %v1000_v7, %v999_v5  ;;  %v954_v12 = vpop.f32.mrb[26].mxu0  ;;  %v1002_v13 = vpop.f32.mrb[26].mxu1 }
 0x18d   : > { %v737_v9 = vmax.f32 %v705_v3, 0.0  ;;  %v955_v14 = vpop.f32.mrb[27].mxu0  ;;  %v1003_v15 = vpop.f32.mrb[27].mxu1 }
 0x18e   : > { %754 = vst.msk [vmem:[%s1561_s5 + $0x58] sm:$0xff] %vm742_vm0, %v721_v8  ;;  %v651_v16 = vmul.f32 %v953_v10, %v1548_v51  ;;  %v667_v17 = vmul.f32 %v1001_v11, %v1548_v51  ;;  %v956_v18 = vadd.f32 %v955_v14, %v954_v12  ;;  %v1004_v19 = vadd.f32 %v1003_v15, %v1002_v13 }
 0x18f   : > { %770 = vst.msk [vmem:[%s1561_s5 + $0xd8] sm:$0xff] %vm742_vm0, %v737_v9 }
 0x190   : > { %v690_v20 = vadd.f32 %v1550_v57, %v651_v16  ;;  %v706_v21 = vadd.f32 %v1550_v57, %v667_v17  ;;  %v652_v22 = vmul.f32 %v956_v18, %v1548_v51  ;;  %v668_v23 = vmul.f32 %v1004_v19, %v1548_v51 }
 0x192   : > { %v722_v24 = vmax.f32 %v690_v20, 0.0  ;;  %v738_v25 = vmax.f32 %v706_v21, 0.0  ;;  %v691_v26 = vadd.f32 %v1550_v57, %v652_v22  ;;  %v707_v27 = vadd.f32 %v1550_v57, %v668_v23  ;;  %v957_v28 = vpop.f32.mrb[28].mxu0  ;;  %v1005_v29 = vpop.f32.mrb[28].mxu1 }
 0x193   : > { %v958_v30 = vpop.f32.mrb[29].mxu0  ;;  %v1006_v31 = vpop.f32.mrb[29].mxu1 }
 0x194   : > { %755 = vst.msk [vmem:[%s1561_s5 + $0x60] sm:$0xff] %vm742_vm0, %v722_v24  ;;  %771 = vst.msk [vmem:[%s1561_s5 + $0xe0] sm:$0xff] %vm742_vm0, %v738_v25  ;;  %v723_v32 = vmax.f32 %v691_v26, 0.0  ;;  %v739_v33 = vmax.f32 %v707_v27, 0.0  ;;  %v959_v34 = vadd.f32 %v958_v30, %v957_v28  ;;  %v1007_v35 = vadd.f32 %v1006_v31, %v1005_v29  ;;  %v960_v36 = vpop.f32.mrb[30].mxu0  ;;  %v1008_v37 = vpop.f32.mrb[30].mxu1 }
 0x195   : > { %v961_v38 = vpop.f32.mrb[31].mxu0  ;;  %v1009_v39 = vpop.f32.mrb[31].mxu1 }
 0x196   : > { %756 = vst.msk [vmem:[%s1561_s5 + $0x68] sm:$0xff] %vm742_vm0, %v723_v32  ;;  %772 = vst.msk [vmem:[%s1561_s5 + $0xe8] sm:$0xff] %vm742_vm0, %v739_v33  ;;  %v653_v40 = vmul.f32 %v959_v34, %v1548_v51  ;;  %v669_v41 = vmul.f32 %v1007_v35, %v1548_v51  ;;  %v962_v42 = vadd.f32 %v961_v38, %v960_v36 }
 0x197   : > { %v1010_v43 = vadd.f32 %v1009_v39, %v1008_v37 }
 0x198   : > { %v692_v44 = vadd.f32 %v1550_v57, %v653_v40  ;;  %v708_v45 = vadd.f32 %v1550_v57, %v669_v41  ;;  %v654_v46 = vmul.f32 %v962_v42, %v1548_v51 }
 0x199   : > { %v670_v47 = vmul.f32 %v1010_v43, %v1548_v51 }
 0x19a   : > { %v724_v48 = vmax.f32 %v692_v44, 0.0  ;;  %v740_v49 = vmax.f32 %v708_v45, 0.0  ;;  %v693_v50 = vadd.f32 %v1550_v57, %v654_v46 }
 0x19b   : > { %v709_v52 = vadd.f32 %v1550_v57, %v670_v47 }
 0x19c   : > { %757 = vst.msk [vmem:[%s1561_s5 + $0x70] sm:$0xff] %vm742_vm0, %v724_v48  ;;  %773 = vst.msk [vmem:[%s1561_s5 + $0xf0] sm:$0xff] %vm742_vm0, %v740_v49  ;;  %v725_v53 = vmax.f32 %v693_v50, 0.0 }
 0x19d   : > { %v741_v54 = vmax.f32 %v709_v52, 0.0 }
 0x19e   : > { %758 = vst.msk [vmem:[%s1561_s5 + $0x78] sm:$0xff] %vm742_vm0, %v725_v53 }
 0x19f   : > { %774 = vst.msk [vmem:[%s1561_s5 + $0xf8] sm:$0xff] %vm742_vm0, %v741_v54 }
 0x1a0 PF: > { %p15_p3 = scmp.ge.s32.totalorder %s1281_s20, 10   ;;  %s1718_s15 = smov %s1221_s16 }
 0x1a1   : > { %s1719_s16 = smov %s1225_s17  ;;  %s1720_s17 = smov %s1291_s23 }
 0x1a2   : > { %s1721_s18 = smov %s1281_s20  ;;  %17 = sbr.rel (!%p15_p3) target bundleno = 4 (0x4), region = 84 }
 0x1a9   :  { %797 = vsyncpa [#allocation3], 1 }
 0x1aa   :  { %799 = vsyncpa [#allocation3 + $0x1], 1 }
 0x1ab   :  { %800 = vsyncpa [#allocation5], 1 }

</bundles_post_ra>
